<compile_context>
chip_gen: v5e
topology: v5e:2x2
jax: 0.10.0
libtpu: 0.0.40
codegen_flags: <defaults>
</compile_context>

<pallas_src>
import functools

import jax
import jax.numpy as jnp
import numpy as np
from jax.experimental import pallas as pl
from jax.experimental.pallas import tpu as pltpu


def make_pe(d_model: int, max_len: int = 1000) -> jnp.ndarray:
    """Sinusoidal positional-encoding buffer, shape (max_len, 1, d_model)."""
    position = np.arange(0, max_len, dtype=np.float32)[:, None]               # (max_len, 1)
    div_term = np.exp(
        np.arange(0, d_model, 2, dtype=np.float32) * (-np.log(10000.0) / d_model)
    )
    pe = np.zeros((max_len, d_model), dtype=np.float32)
    pe[:, 0::2] = np.sin(position * div_term)
    pe[:, 1::2] = np.cos(position * div_term)[:, : d_model // 2]
    # unsqueeze(0).transpose(0,1)  ->  (max_len, 1, d_model)
    return jnp.asarray(pe[:, None, :])


# ---------------------------------------------------------------------------
# Kernels
# ---------------------------------------------------------------------------

def _add_pe_folded_kernel(x_ref, pe_ref, o_ref, *, batch: int, d_model: int):
    # x_ref/o_ref: (TS, batch*d_model)   pe_ref: (TS, d_model)
    # Only used when d_model % 128 == 0: every lane slice below starts at a
    # 128-multiple, so loads/stores are unmasked and pe needs no lane rotate.
    pe = pe_ref[...]                              # loaded once per sequence block
    for b in range(batch):                        # static unroll over batch
        lo = b * d_model
        hi = lo + d_model
        o_ref[:, lo:hi] = (x_ref[:, lo:hi] + pe).astype(o_ref.dtype)


def _add_pe_bcast_kernel(x_ref, pe_ref, o_ref):
    # x_ref/o_ref: (TS, B, D)   pe_ref: (TS, 1, D)
    # Single sublane-broadcast add; no in-kernel slicing or relayout.
    o_ref[...] = (x_ref[...] + pe_ref[...]).astype(o_ref.dtype)


# ---------------------------------------------------------------------------
# Tiling helpers
# ---------------------------------------------------------------------------

def _round_up(n: int, m: int) -> int:
    return -(-n // m) * m


def _choose_seq_tile(S: int, per_row_bytes: int, budget_bytes: int) -> int:
    """Pick a sequence tile that is either == S (full dim) or a multiple of 8 < S."""
    ts = budget_bytes // max(per_row_bytes, 1)
    if ts >= S:
        if S > 16:
            # Keep >= 2 grid steps so both v7x TensorCores share the bandwidth.
            ts = max(8, _round_up(-(-S // 2), 8))
            return ts if ts < S else S
        return S
    ts = max(8, (ts // 8) * 8)
    return S if ts >= S else ts


# ---------------------------------------------------------------------------
# Wrapper
# ---------------------------------------------------------------------------

def positional_encoding_forward(x: jnp.ndarray, pe: jnp.ndarray, *,
                                seq_tile: int | None = None,
                                vmem_limit_bytes: int = 32 * 1024 * 1024) -> jnp.ndarray:
    """x: (S, B, D); pe: (max_len, 1, D).  Returns x + pe[:S] (broadcast over B)."""
    S, B, D = x.shape
    max_len = pe.shape[0]
    assert pe.shape == (max_len, 1, D)
    assert S <= max_len, "sequence longer than positional-encoding buffer"

    x_isz = jnp.dtype(x.dtype).itemsize
    pe_isz = jnp.dtype(pe.dtype).itemsize
    budget = (3 * vmem_limit_bytes) // 4              # leave pipeline headroom

    cparams = pltpu.CompilerParams(
        dimension_semantics=("parallel",),
        vmem_limit_bytes=vmem_limit_bytes,
    )
    cost = pl.CostEstimate(
        flops=S * B * D,
        transcendentals=0,
        bytes_accessed=2 * S * B * D * x_isz + S * D * pe_isz,
    )

    if D % 128 == 0:
        # ---- lane-dense folded-slab path ------------------------------------
        # Free (metadata-only) reshapes of contiguous arrays -- no extra HBM pass.
        x2 = x.reshape(S, B * D)
        pe2 = pe.reshape(max_len, D)                  # full buffer; no pe[:S] slice op
        # Double-buffered x-in and out tiles + double-buffered pe tile (all lane-aligned).
        per_row = 2 * 2 * B * D * x_isz + 2 * D * pe_isz
        ts = seq_tile or _choose_seq_tile(S, per_row, budget)

        kernel = functools.partial(_add_pe_folded_kernel, batch=B, d_model=D)
        out2 = pl.pallas_call(
            kernel,
            out_shape=jax.ShapeDtypeStruct((S, B * D), x.dtype),
            grid_spec=pltpu.PrefetchScalarGridSpec(
                num_scalar_prefetch=0,
                grid=(pl.cdiv(S, ts),),
                in_specs=[
                    pl.BlockSpec((ts, B * D), lambda i: (i, 0)),   # x (lane-dense slab)
                    pl.BlockSpec((ts, D), lambda i: (i, 0)),       # pe rows for this block
                ],
                out_specs=pl.BlockSpec((ts, B * D), lambda i: (i, 0)),
            ),
            compiler_params=cparams,
            cost_estimate=cost,
        )(x2, pe2)
        return out2.reshape(S, B, D)

    # ---- general 3-D broadcast path (D not a multiple of 128) ---------------
    # Budget against the *padded* VMEM footprint: (B, D) tiles round to (8, 128).
    b_pad = _round_up(B, 8)
    d_pad = _round_up(D, 128)
    per_row = 2 * 2 * b_pad * d_pad * x_isz + 2 * 8 * d_pad * pe_isz
    ts = seq_tile or _choose_seq_tile(S, per_row, budget)

    return pl.pallas_call(
        _add_pe_bcast_kernel,
        out_shape=jax.ShapeDtypeStruct((S, B, D), x.dtype),
        grid_spec=pltpu.PrefetchScalarGridSpec(
            num_scalar_prefetch=0,
            grid=(pl.cdiv(S, ts),),
            in_specs=[
                pl.BlockSpec((ts, B, D), lambda i: (i, 0, 0)),     # x
                pl.BlockSpec((ts, 1, D), lambda i: (i, 0, 0)),     # pe (broadcast over B)
            ],
            out_specs=pl.BlockSpec((ts, B, D), lambda i: (i, 0, 0)),
        ),
        compiler_params=cparams,
        cost_estimate=cost,
    )(x, pe)


if __name__ == "__main__":
    max_len = 1000
    key = jax.random.PRNGKey(0)

    # --- small shape from the module spec (exercises the 3-D broadcast path) ---
    seq_len, batch, d_model = 8, 2, 32
    x = jax.random.normal(key, (seq_len, batch, d_model), dtype=jnp.float32)
    pe = make_pe(d_model, max_len=max_len)
    out = jax.block_until_ready(positional_encoding_forward(x, pe))
    ref = x + pe[:seq_len]
    assert out.shape == (seq_len, batch, d_model)
    assert jnp.allclose(out, ref, atol=1e-6), "mismatch vs reference (bcast path)"

    # --- aligned d_model (exercises the lane-dense folded-slab path) ----------
    seq_len2, batch2, d_model2 = 16, 2, 128
    key2 = jax.random.fold_in(key, 1)
    x2 = jax.random.normal(key2, (seq_len2, batch2, d_model2), dtype=jnp.float32)
    pe2 = make_pe(d_model2, max_len=max_len)
    out2 = jax.block_until_ready(positional_encoding_forward(x2, pe2))
    ref2 = x2 + pe2[:seq_len2]
    assert out2.shape == (seq_len2, batch2, d_model2)
    assert jnp.allclose(out2, ref2, atol=1e-6), "mismatch vs reference (folded path)"

    print("KERNEL_OK")
</pallas_src>

<mosaic_0001>
module attributes {stable_mosaic.version = 11 : i64} {
  func.func @_add_pe_bcast_kernel(%arg0: i32, %arg1: memref<8x2x32xf32, #tpu.memory_space<vmem>>, %arg2: memref<8x1x32xf32, #tpu.memory_space<vmem>>, %arg3: memref<8x2x32xf32, #tpu.memory_space<vmem>>) attributes {dimension_semantics = [#tpu.dimension_semantics<parallel>], iteration_bounds = array<i64: 1>, scalar_prefetch = 0 : i64, scratch_operands = 0 : i64, tpu.core_type = #tpu.core_type<tc>, window_params = [{transform_indices = @transform_0, window_bounds = array<i64: 8, 2, 32>}, {transform_indices = @transform_1, window_bounds = array<i64: 8, 1, 32>}, {transform_indices = @transform_2, window_bounds = array<i64: 8, 2, 32>}]} {
    %c0 = arith.constant 0 : index
    %c0_0 = arith.constant 0 : index
    %c0_1 = arith.constant 0 : index
    %0 = vector.load %arg1[%c0, %c0_0, %c0_1] : memref<8x2x32xf32, #tpu.memory_space<vmem>>, vector<8x2x32xf32>
    %c0_2 = arith.constant 0 : index
    %c0_3 = arith.constant 0 : index
    %c0_4 = arith.constant 0 : index
    %1 = vector.load %arg2[%c0_2, %c0_3, %c0_4] : memref<8x1x32xf32, #tpu.memory_space<vmem>>, vector<8x1x32xf32>
    %2 = vector.broadcast %1 : vector<8x1x32xf32> to vector<8x2x32xf32>
    %3 = arith.addf %0, %2 : vector<8x2x32xf32>
    %c0_5 = arith.constant 0 : index
    %c0_6 = arith.constant 0 : index
    %c0_7 = arith.constant 0 : index
    %4 = vector.load %arg3[%c0_5, %c0_6, %c0_7] : memref<8x2x32xf32, #tpu.memory_space<vmem>>, vector<8x2x32xf32>
    tpu.vector_store %arg3[%c0_5, %c0_6, %c0_7], %3 {strides = array<i32>} : memref<8x2x32xf32, #tpu.memory_space<vmem>>, vector<8x2x32xf32>,
    return
  }
  func.func @transform_0(%arg0: i32) -> (i32, i32, i32) {
    %c0_i32 = arith.constant 0 : i32
    %c0_i32_0 = arith.constant 0 : i32
    %c0_i32_1 = arith.constant 0 : i32
    return %arg0, %c0_i32, %c0_i32_0 : i32, i32, i32
  }
  func.func @transform_1(%arg0: i32) -> (i32, i32, i32) {
    %c0_i32 = arith.constant 0 : i32
    %c0_i32_0 = arith.constant 0 : i32
    %c0_i32_1 = arith.constant 0 : i32
    return %arg0, %c0_i32, %c0_i32_0 : i32, i32, i32
  }
  func.func @transform_2(%arg0: i32) -> (i32, i32, i32) {
    %c0_i32 = arith.constant 0 : i32
    %c0_i32_0 = arith.constant 0 : i32
    %c0_i32_1 = arith.constant 0 : i32
    return %arg0, %c0_i32, %c0_i32_0 : i32, i32, i32
  }
}

</mosaic_0001>

<bundles_post_ra>
// kernel: tpu_custom_call.1
= control target key start
LH: loop header
LB: loop body
LE: loop exit
PB: predicated region body
PF: predicated region fallthrough
CT: control target
= control target key end

     0   :  { %vm60_vm0 = vcmask 254976   ;;  %s201_s0 = inlined_call_operand.vmem [shape: f32[8,2,32], index: 0, kind: input, shape index: {}]   ;;  %s202_s1 = inlined_call_operand.vmem [shape: f32[1000,1,32], index: 1, kind: input, shape index: {}]   ;;  %s203_s2 = inlined_call_operand.hbm [shape: f32[8,2,32], index: 2, kind: output, shape index: {}]  }
   0x1   :  { %v12_v0 = vld [vmem:[%s201_s0] sm:$0x3]  ;;  %v13_v2 = vld [vmem:[%s201_s0 + $0x2] sm:$0x3]  ;;  %v14_v5 = vld [vmem:[%s201_s0 + $0x4] sm:$0x3] }
   0x2   :  { %v90_v1 = vld [vmem:[%s202_s1] ss:$0 sm:$0xff]  ;;  %v91_v4 = vld [vmem:[%s202_s1 + $0x1] ss:$0 sm:$0xff]  ;;  %v92_v6 = vld [vmem:[%s202_s1 + $0x2] ss:$0 sm:$0xff] }
   0x3   :  { %v52_v3 = vadd.f32 %v90_v1, %v12_v0  ;;  %v15_v7 = vld [vmem:[%s201_s0 + $0x6] sm:$0x3]  ;;  %v53_v8 = vadd.f32 %v91_v4, %v13_v2  ;;  %v93_v9 = vld [vmem:[%s202_s1 + $0x3] ss:$0 sm:$0xff]  ;;  %v16_v10 = vld [vmem:[%s201_s0 + $0x8] sm:$0x3]  ;;  %v54_v11 = vadd.f32 %v92_v6, %v14_v5 }
   0x4   :  { %v94_v12 = vld [vmem:[%s202_s1 + $0x4] ss:$0 sm:$0xff]  ;;  %v17_v13 = vld [vmem:[%s201_s0 + $0xa] sm:$0x3]  ;;  %v55_v14 = vadd.f32 %v93_v9, %v15_v7  ;;  %v95_v15 = vld [vmem:[%s202_s1 + $0x5] ss:$0 sm:$0xff] }
   0x5   :  { %61 = vst.msk [vmem:[#allocation2] sm:$0x3] %vm60_vm0, %v52_v3  ;;  %v56_v16 = vadd.f32 %v94_v12, %v16_v10  ;;  %v18_v17 = vld [vmem:[%s201_s0 + $0xc] sm:$0x3]  ;;  %v57_v18 = vadd.f32 %v95_v15, %v17_v13  ;;  %v96_v19 = vld [vmem:[%s202_s1 + $0x6] ss:$0 sm:$0xff] }
   0x6   :  { %62 = vst.msk [vmem:[#allocation2 + $0x2] sm:$0x3] %vm60_vm0, %v53_v8  ;;  %v19_v20 = vld [vmem:[%s201_s0 + $0xe] sm:$0x3]  ;;  %v97_v21 = vld [vmem:[%s202_s1 + $0x7] ss:$0 sm:$0xff]  ;;  %v58_v22 = vadd.f32 %v96_v19, %v18_v17 }
   0x7   :  { %63 = vst.msk [vmem:[#allocation2 + $0x4] sm:$0x3] %vm60_vm0, %v54_v11 }
   0x8   :  { %64 = vst.msk [vmem:[#allocation2 + $0x6] sm:$0x3] %vm60_vm0, %v55_v14 }
   0x9   :  { %65 = vst.msk [vmem:[#allocation2 + $0x8] sm:$0x3] %vm60_vm0, %v56_v16 }
   0xa   :  { %66 = vst.msk [vmem:[#allocation2 + $0xa] sm:$0x3] %vm60_vm0, %v57_v18 }
   0xb   :  { %7 = vsyncpa [#allocation3], 0  ;;  %s124_s13 = smov [#allocation2]   ;;  %s75_s17 = sshll.u32 %s203_s2, 4  ;;  %v59_v23 = vadd.f32 %v97_v21, %v19_v20  ;;  %67 = vst.msk [vmem:[#allocation2 + $0xc] sm:$0x3] %vm60_vm0, %v58_v22  ;;  %s76_s17 = int_to_ptr.hbm [resolvable:$true] %s75_s17 }
   0xc   :  { %s73_s14 = sshll.u32 %s124_s13, 4  ;;  %s125_s0 = smov 32   ;;  %s74_s14 = int_to_ptr.vmem [resolvable:$true] %s73_s14 }
   0xd   :  { %68 = vst.msk [vmem:[#allocation2 + $0xe] sm:$0x3] %vm60_vm0, %v59_v23  ;;  %s126_s18 = smov 2  }
   0xe   :  { %81 = dma.vmem_to_hbm [thread:$0]  %s74_s14, 256, %s76_s17, [#allocation3], %s125_s0, %s125_s0, %s126_s18  }
   0xf   :  { %122 = dma.done.wait [#allocation3], 256  }
  0x10   :  { %123 = vsyncadd [#allocation3], 4294967040 }
  0x11   :  { %86 = vsyncpa [#allocation3], 1 }

</bundles_post_ra>
